<compile_context>
chip_gen: v7x
topology: tpu7x:2x2x1
jax: 0.10.0
libtpu: 0.0.40
codegen_flags: <defaults>
</compile_context>

<pallas_src>
import functools

import numpy as np
import jax
import jax.numpy as jnp
from jax.experimental import pallas as pl
from jax.experimental.pallas import tpu as pltpu

NUM_PIN_LINEAR_BASIS_ELEMENTS = 10
MIX_MVPSEUDOSCALAR_INTO_SCALAR = True

# ----------------------------------------------------------------------------
# Cl(1,3) Pin-equivariant linear basis (host-side construction, plain numpy)
# Blade ordering: [1, e0,e1,e2,e3, e01,e02,e03,e12,e13,e23, e012,e013,e023,e123, e0123]
# Metric signature (+,-,-,-).
# ----------------------------------------------------------------------------
_METRIC = (1.0, -1.0, -1.0, -1.0)
_BLADES = [(), (0,), (1,), (2,), (3,),
           (0, 1), (0, 2), (0, 3), (1, 2), (1, 3), (2, 3),
           (0, 1, 2), (0, 1, 3), (0, 2, 3), (1, 2, 3),
           (0, 1, 2, 3)]
_BLADE_INDEX = {b: i for i, b in enumerate(_BLADES)}


def _geometric_product_blades(a, b):
    """Geometric product of two basis blades -> (result blade, sign)."""
    lst = list(a) + list(b)
    sign = 1.0
    swapped = True
    while swapped:
        swapped = False
        for k in range(len(lst) - 1):
            if lst[k] > lst[k + 1]:
                lst[k], lst[k + 1] = lst[k + 1], lst[k]
                sign = -sign
                swapped = True
    out = []
    k = 0
    while k < len(lst):
        if k + 1 < len(lst) and lst[k] == lst[k + 1]:
            sign *= _METRIC[lst[k]]
            k += 2
        else:
            out.append(lst[k])
            k += 1
    return tuple(out), sign


def compute_pin_equi_linear_basis():
    basis = np.zeros((NUM_PIN_LINEAR_BASIS_ELEMENTS, 16, 16), dtype=np.float32)
    # grade projections (basis elements 0..4)
    for x, blade in enumerate(_BLADES):
        basis[len(blade), x, x] = 1.0
    # grade projection followed by right multiplication with pseudoscalar (5..9)
    pseudo = (0, 1, 2, 3)
    for x, blade in enumerate(_BLADES):
        out_blade, sign = _geometric_product_blades(blade, pseudo)
        y = _BLADE_INDEX[out_blade]
        basis[5 + len(blade), x, y] = sign
    return basis


# ----------------------------------------------------------------------------
# Deterministic parameter initialization (mirrors reset_parameters("default"))
# ----------------------------------------------------------------------------
def init_params(key, in_mv, out_mv, in_s, out_s):
    # "default": mv_factor = s_factor = gain * (1/sqrt(3)) * sqrt(3) = 1.0
    mv_factor = 1.0
    s_factor = 1.0
    keys = jax.random.split(key, 6)

    # equi-linear weight (out_mv, in_mv, 10)
    bound = mv_factor / np.sqrt(in_mv)
    weight = jax.random.uniform(
        keys[0], (out_mv, in_mv, NUM_PIN_LINEAR_BASIS_ELEMENTS),
        minval=-bound, maxval=bound, dtype=jnp.float32)
    # components 0 and -1 are re-drawn with bound/sqrt(2) when s2mvs exists
    scale = np.ones(NUM_PIN_LINEAR_BASIS_ELEMENTS, np.float32)
    scale[0] = 1.0 / np.sqrt(2.0)
    scale[-1] = 1.0 / np.sqrt(2.0)
    weight = weight * jnp.asarray(scale)

    # s2mvs: Linear(in_s, 2*out_mv, bias=True)
    b_w = mv_factor / np.sqrt(in_s) / np.sqrt(2.0)
    w_s2mv = jax.random.uniform(keys[1], (2 * out_mv, in_s),
                                minval=-b_w, maxval=b_w, dtype=jnp.float32)
    b_b = 1.0 / np.sqrt(in_s + in_mv)
    b_s2mv = jax.random.uniform(keys[2], (2 * out_mv,),
                                minval=-b_b, maxval=b_b, dtype=jnp.float32)

    # mvs2s: Linear(2*in_mv, out_s, bias=True)
    b_w = s_factor / np.sqrt(2 * in_mv) / np.sqrt(2.0)
    w_mvs2s = jax.random.uniform(keys[3], (out_s, 2 * in_mv),
                                 minval=-b_w, maxval=b_w, dtype=jnp.float32)
    b_b = s_factor / np.sqrt(2 * in_mv + in_s)
    b_mvs2s = jax.random.uniform(keys[4], (out_s,),
                                 minval=-b_b, maxval=b_b, dtype=jnp.float32)

    # s2s: Linear(in_s, out_s, bias=False)
    b_w = s_factor / np.sqrt(in_s) / np.sqrt(2.0)
    w_s2s = jax.random.uniform(keys[5], (out_s, in_s),
                               minval=-b_w, maxval=b_w, dtype=jnp.float32)

    return dict(weight=weight, w_s2mv=w_s2mv, b_s2mv=b_s2mv,
                w_mvs2s=w_mvs2s, b_mvs2s=b_mvs2s, w_s2s=w_s2s)


# ----------------------------------------------------------------------------
# Glue: fold module parameters into four small dense weight blocks + biases
# ----------------------------------------------------------------------------
def build_fused_weights(params, basis, in_mv, out_mv, in_s, out_s):
    Kmv = in_mv * 16
    Nmv = out_mv * 16

    # A: (Kmv, Nmv)  Pin-equivariant linear map
    A = jnp.einsum('jib,bxy->ixjy', params['weight'], basis).reshape(Kmv, Nmv)

    # B: scalars -> mv components 0 and 15 of each output channel
    j = np.arange(out_mv)
    B = jnp.zeros((in_s, Nmv), jnp.float32)
    B = B.at[:, j * 16 + 0].set(params['w_s2mv'][0::2, :].T)
    B = B.at[:, j * 16 + 15].set(params['w_s2mv'][1::2, :].T)
    bias_mv = jnp.zeros((Nmv,), jnp.float32)
    bias_mv = bias_mv.at[j * 16 + 0].set(params['b_s2mv'][0::2])
    bias_mv = bias_mv.at[j * 16 + 15].set(params['b_s2mv'][1::2])

    # C: mv components 0 and 15 of each input channel -> output scalars
    i = np.arange(in_mv)
    C = jnp.zeros((Kmv, out_s), jnp.float32)
    C = C.at[i * 16 + 0, :].set(params['w_mvs2s'][:, 0::2].T)
    C = C.at[i * 16 + 15, :].set(params['w_mvs2s'][:, 1::2].T)

    D = params['w_s2s'].T            # (in_s, out_s)
    bias_s = params['b_mvs2s']       # (out_s,)

    return dict(A=A, B=B, C=C, D=D, bias_mv=bias_mv, bias_s=bias_s)


# ----------------------------------------------------------------------------
# Pallas kernel: row-tiled GEMM against resident weights, f32 accumulation
# ----------------------------------------------------------------------------
def _equi_linear_kernel(mv_ref, s_ref, a_ref, b_ref, c_ref, d_ref,
                        bmv_ref, bs_ref, omv_ref, os_ref, *, compute_dtype):
    x_mv = mv_ref[...].astype(compute_dtype)
    x_s = s_ref[...].astype(compute_dtype)

    acc_mv = jnp.dot(x_mv, a_ref[...], preferred_element_type=jnp.float32)
    acc_mv = acc_mv + jnp.dot(x_s, b_ref[...], preferred_element_type=jnp.float32)

    acc_s = jnp.dot(x_mv, c_ref[...], preferred_element_type=jnp.float32)
    acc_s = acc_s + jnp.dot(x_s, d_ref[...], preferred_element_type=jnp.float32)

    omv_ref[...] = (acc_mv + bmv_ref[...]).astype(omv_ref.dtype)
    os_ref[...] = (acc_s + bs_ref[...]).astype(os_ref.dtype)


def _round_up(x, m):
    return ((x + m - 1) // m) * m


def _vmem_budget_bytes():
    """Generation-aware VMEM budget, capped so it is safe on v7x (64 MiB / TC)."""
    cap = 64 * 1024 * 1024
    try:
        cap = int(pltpu.get_tpu_info().vmem_capacity_bytes)
    except Exception:
        pass
    return max(16 * 1024 * 1024, min(cap * 3 // 4, 48 * 1024 * 1024))


def _pick_tile_rows(n, bytes_per_row, resident_bytes, budget_bytes,
                    row_mult=16, min_rows=16, max_rows=4096):
    """Grow the row tile toward the VMEM budget; prefer >=2 tiles for megacore."""
    avail = budget_bytes - resident_bytes
    if avail < min_rows * bytes_per_row:
        tile = min_rows
    else:
        tile = (int(avail // bytes_per_row) // row_mult) * row_mult
        tile = max(min_rows, min(tile, max_rows))
    # never larger than the (row-rounded) problem
    tile = min(tile, _round_up(n, row_mult))
    # >=2 row tiles when the problem is big enough (feeds both v7x TCs / megacore)
    if n >= 2 * min_rows and pl.cdiv(n, tile) < 2:
        tile = max(min_rows, _round_up(pl.cdiv(n, 2), row_mult))
    return max(tile, min_rows)


def equi_linear_pallas(multivectors, scalars, fused, out_mv_channels,
                       out_s_channels, *, compute_dtype=jnp.bfloat16,
                       out_dtype=None, max_tile_rows=4096):
    batch_shape = multivectors.shape[:-2]
    in_mv = multivectors.shape[-2]
    in_s = scalars.shape[-1]
    n = int(np.prod(batch_shape)) if batch_shape else 1

    Kmv = in_mv * 16
    Nmv = out_mv_channels * 16
    out_s = out_s_channels

    out_dtype = compute_dtype if out_dtype is None else out_dtype
    in_bytes = multivectors.dtype.itemsize
    cbytes = jnp.dtype(compute_dtype).itemsize
    obytes = jnp.dtype(out_dtype).itemsize

    # Activation streams stay in their native dtype; cast happens inside the kernel.
    mv_flat = multivectors.reshape(n, Kmv)
    s_flat = scalars.reshape(n, in_s)

    # Small resident weights are pre-cast (one-time cost, reused every tile).
    A = fused['A'].astype(compute_dtype)
    B = fused['B'].astype(compute_dtype)
    C = fused['C'].astype(compute_dtype)
    D = fused['D'].astype(compute_dtype)
    b_mv = fused['bias_mv'].reshape(1, Nmv).astype(jnp.float32)
    b_s = fused['bias_s'].reshape(1, out_s).astype(jnp.float32)

    # Conservative per-row VMEM footprint (double-buffered streams, f32 accumulators,
    # in-kernel cast copies) + resident weights/biases (assume double-buffered).
    bytes_per_row = (2 * in_bytes * (Kmv + in_s)
                     + cbytes * (Kmv + in_s)
                     + 4 * (Nmv + out_s)
                     + 2 * obytes * (Nmv + out_s))
    resident = 2 * cbytes * (Kmv + in_s) * (Nmv + out_s) + 2 * 4 * (Nmv + out_s)
    budget = _vmem_budget_bytes()
    tile_rows = _pick_tile_rows(n, bytes_per_row, resident, budget,
                                max_rows=max_tile_rows)
    grid = (pl.cdiv(n, tile_rows),)

    flops = 2 * n * (Kmv + in_s) * (Nmv + out_s)
    bytes_accessed = (n * (Kmv + in_s) * in_bytes
                      + n * (Nmv + out_s) * obytes
                      + (Kmv + in_s) * (Nmv + out_s) * cbytes
                      + (Nmv + out_s) * 4)

    kernel = functools.partial(_equi_linear_kernel, compute_dtype=compute_dtype)

    out_mv_flat, out_s_flat = pl.pallas_call(
        kernel,
        out_shape=(jax.ShapeDtypeStruct((n, Nmv), out_dtype),
                   jax.ShapeDtypeStruct((n, out_s), out_dtype)),
        grid=grid,
        in_specs=[
            pl.BlockSpec((tile_rows, Kmv), lambda i: (i, 0)),   # mv activations
            pl.BlockSpec((tile_rows, in_s), lambda i: (i, 0)),  # scalar activations
            pl.BlockSpec((Kmv, Nmv), lambda i: (0, 0)),         # A (resident)
            pl.BlockSpec((in_s, Nmv), lambda i: (0, 0)),        # B (resident)
            pl.BlockSpec((Kmv, out_s), lambda i: (0, 0)),       # C (resident)
            pl.BlockSpec((in_s, out_s), lambda i: (0, 0)),      # D (resident)
            pl.BlockSpec((1, Nmv), lambda i: (0, 0)),           # bias_mv (resident)
            pl.BlockSpec((1, out_s), lambda i: (0, 0)),         # bias_s (resident)
        ],
        out_specs=(
            pl.BlockSpec((tile_rows, Nmv), lambda i: (i, 0)),
            pl.BlockSpec((tile_rows, out_s), lambda i: (i, 0)),
        ),
        compiler_params=pltpu.CompilerParams(
            dimension_semantics=("parallel",),
            vmem_limit_bytes=int(budget),
        ),
        cost_estimate=pl.CostEstimate(flops=flops, transcendentals=0,
                                      bytes_accessed=bytes_accessed),
    )(mv_flat, s_flat, A, B, C, D, b_mv, b_s)

    out_mv = out_mv_flat.reshape(*batch_shape, out_mv_channels, 16)
    out_s_arr = out_s_flat.reshape(*batch_shape, out_s_channels)
    return out_mv, out_s_arr


# ----------------------------------------------------------------------------
# Pure-JAX reference (mirrors the PyTorch forward) for a correctness check
# ----------------------------------------------------------------------------
def reference_forward(mv, scalars, params, basis):
    out_mv = jnp.einsum('jib,bxy,...ix->...jy', params['weight'], basis, mv)
    s2mv = scalars @ params['w_s2mv'].T + params['b_s2mv']
    s2mv = s2mv.reshape(*out_mv.shape[:-2], out_mv.shape[-2], 2)
    out_mv = out_mv.at[..., 0].add(s2mv[..., 0])
    out_mv = out_mv.at[..., 15].add(s2mv[..., 1])
    mv_sel = jnp.stack([mv[..., 0], mv[..., 15]], axis=-1)
    mv_sel = mv_sel.reshape(*mv.shape[:-2], -1)
    out_s = mv_sel @ params['w_mvs2s'].T + params['b_mvs2s'] + scalars @ params['w_s2s'].T
    return out_mv, out_s


if __name__ == "__main__":
    # Small, module-consistent shapes: batch=(2, 8) tokens, 4 mv channels in/out,
    # 8 scalar channels in/out.
    in_mv, out_mv, in_s, out_s = 4, 4, 8, 8
    key = jax.random.PRNGKey(0)
    k_mv, k_s, k_p = jax.random.split(key, 3)

    multivectors = jax.random.normal(k_mv, (2, 8, in_mv, 16), dtype=jnp.float32)
    scalars = jax.random.normal(k_s, (2, 8, in_s), dtype=jnp.float32)

    basis = jnp.asarray(compute_pin_equi_linear_basis())
    params = init_params(k_p, in_mv, out_mv, in_s, out_s)
    fused = build_fused_weights(params, basis, in_mv, out_mv, in_s, out_s)

    out_mv_ref, out_s_ref = reference_forward(multivectors, scalars, params, basis)

    # 1) float32 compute path -> float32 outputs: tight check against the reference.
    out_mv_f32, out_s_f32 = equi_linear_pallas(
        multivectors, scalars, fused, out_mv, out_s, compute_dtype=jnp.float32)
    jax.block_until_ready(out_mv_f32)
    jax.block_until_ready(out_s_f32)
    assert out_mv_f32.shape == (2, 8, out_mv, 16)
    assert out_s_f32.shape == (2, 8, out_s)
    np.testing.assert_allclose(np.asarray(out_mv_f32), np.asarray(out_mv_ref),
                               rtol=1e-5, atol=1e-5)
    np.testing.assert_allclose(np.asarray(out_s_f32), np.asarray(out_s_ref),
                               rtol=1e-5, atol=1e-5)

    # 2) bfloat16 production path: bf16 MXU inputs, f32 accumulation, bf16 writeback.
    out_mv_bf, out_s_bf = equi_linear_pallas(
        multivectors, scalars, fused, out_mv, out_s, compute_dtype=jnp.bfloat16)
    jax.block_until_ready(out_mv_bf)
    jax.block_until_ready(out_s_bf)
    np.testing.assert_allclose(np.asarray(out_mv_bf.astype(jnp.float32)),
                               np.asarray(out_mv_ref), rtol=5e-2, atol=5e-2)
    np.testing.assert_allclose(np.asarray(out_s_bf.astype(jnp.float32)),
                               np.asarray(out_s_ref), rtol=5e-2, atol=5e-2)

    print("KERNEL_OK")
</pallas_src>

<mosaic_0001>
module attributes {stable_mosaic.version = 11 : i64} {
  func.func @_equi_linear_kernel(%arg0: i32, %arg1: memref<16x64xf32, #tpu.memory_space<vmem>>, %arg2: memref<16x8xf32, #tpu.memory_space<vmem>>, %arg3: memref<64x64xf32, #tpu.memory_space<vmem>>, %arg4: memref<8x64xf32, #tpu.memory_space<vmem>>, %arg5: memref<64x8xf32, #tpu.memory_space<vmem>>, %arg6: memref<8x8xf32, #tpu.memory_space<vmem>>, %arg7: memref<1x64xf32, #tpu.memory_space<vmem>>, %arg8: memref<1x8xf32, #tpu.memory_space<vmem>>, %arg9: memref<16x64xf32, #tpu.memory_space<vmem>>, %arg10: memref<16x8xf32, #tpu.memory_space<vmem>>) attributes {dimension_semantics = [#tpu.dimension_semantics<parallel>], iteration_bounds = array<i64: 1>, scalar_prefetch = 0 : i64, scratch_operands = 0 : i64, tpu.core_type = #tpu.core_type<tc>, window_params = [{transform_indices = @transform_0, window_bounds = array<i64: 16, 64>}, {transform_indices = @transform_1, window_bounds = array<i64: 16, 8>}, {pipeline_mode = #tpu.pipeline_mode<synchronous>, transform_indices = @transform_2, window_bounds = array<i64: 64, 64>}, {pipeline_mode = #tpu.pipeline_mode<synchronous>, transform_indices = @transform_3, window_bounds = array<i64: 8, 64>}, {pipeline_mode = #tpu.pipeline_mode<synchronous>, transform_indices = @transform_4, window_bounds = array<i64: 64, 8>}, {pipeline_mode = #tpu.pipeline_mode<synchronous>, transform_indices = @transform_5, window_bounds = array<i64: 8, 8>}, {pipeline_mode = #tpu.pipeline_mode<synchronous>, transform_indices = @transform_6, window_bounds = array<i64: 1, 64>}, {pipeline_mode = #tpu.pipeline_mode<synchronous>, transform_indices = @transform_7, window_bounds = array<i64: 1, 8>}, {transform_indices = @transform_8, window_bounds = array<i64: 16, 64>}, {transform_indices = @transform_9, window_bounds = array<i64: 16, 8>}]} {
    %c0 = arith.constant 0 : index
    %c0_0 = arith.constant 0 : index
    %0 = vector.load %arg1[%c0, %c0_0] : memref<16x64xf32, #tpu.memory_space<vmem>>, vector<16x64xf32>
    %c0_1 = arith.constant 0 : index
    %c0_2 = arith.constant 0 : index
    %1 = vector.load %arg2[%c0_1, %c0_2] : memref<16x8xf32, #tpu.memory_space<vmem>>, vector<16x8xf32>
    %c0_3 = arith.constant 0 : index
    %c0_4 = arith.constant 0 : index
    %2 = vector.load %arg3[%c0_3, %c0_4] : memref<64x64xf32, #tpu.memory_space<vmem>>, vector<64x64xf32>
    %cst = arith.constant dense<0.000000e+00> : vector<16x64xf32>
    %3 = tpu.matmul %0, %2, %cst {dimension_numbers = #tpu.dot_dimension_numbers<[1], [0], [0], [1], [0, 0, 1, 1], [], []>} : vector<16x64xf32>, vector<64x64xf32>, vector<16x64xf32> -> vector<16x64xf32>
    %c0_5 = arith.constant 0 : index
    %c0_6 = arith.constant 0 : index
    %4 = vector.load %arg4[%c0_5, %c0_6] : memref<8x64xf32, #tpu.memory_space<vmem>>, vector<8x64xf32>
    %cst_7 = arith.constant dense<0.000000e+00> : vector<16x64xf32>
    %5 = tpu.matmul %1, %4, %cst_7 {dimension_numbers = #tpu.dot_dimension_numbers<[1], [0], [0], [1], [0, 0, 1, 1], [], []>} : vector<16x8xf32>, vector<8x64xf32>, vector<16x64xf32> -> vector<16x64xf32>
    %6 = arith.addf %3, %5 : vector<16x64xf32>
    %c0_8 = arith.constant 0 : index
    %c0_9 = arith.constant 0 : index
    %7 = vector.load %arg5[%c0_8, %c0_9] : memref<64x8xf32, #tpu.memory_space<vmem>>, vector<64x8xf32>
    %cst_10 = arith.constant dense<0.000000e+00> : vector<16x8xf32>
    %8 = tpu.matmul %0, %7, %cst_10 {dimension_numbers = #tpu.dot_dimension_numbers<[1], [0], [0], [1], [0, 0, 1, 1], [], []>} : vector<16x64xf32>, vector<64x8xf32>, vector<16x8xf32> -> vector<16x8xf32>
    %c0_11 = arith.constant 0 : index
    %c0_12 = arith.constant 0 : index
    %9 = vector.load %arg6[%c0_11, %c0_12] : memref<8x8xf32, #tpu.memory_space<vmem>>, vector<8x8xf32>
    %cst_13 = arith.constant dense<0.000000e+00> : vector<16x8xf32>
    %10 = tpu.matmul %1, %9, %cst_13 {dimension_numbers = #tpu.dot_dimension_numbers<[1], [0], [0], [1], [0, 0, 1, 1], [], []>} : vector<16x8xf32>, vector<8x8xf32>, vector<16x8xf32> -> vector<16x8xf32>
    %11 = arith.addf %8, %10 : vector<16x8xf32>
    %c0_14 = arith.constant 0 : index
    %c0_15 = arith.constant 0 : index
    %12 = vector.load %arg7[%c0_14, %c0_15] : memref<1x64xf32, #tpu.memory_space<vmem>>, vector<1x64xf32>
    %13 = vector.broadcast %12 : vector<1x64xf32> to vector<16x64xf32>
    %14 = arith.addf %6, %13 : vector<16x64xf32>
    %c0_16 = arith.constant 0 : index
    %c0_17 = arith.constant 0 : index
    %15 = vector.load %arg9[%c0_16, %c0_17] : memref<16x64xf32, #tpu.memory_space<vmem>>, vector<16x64xf32>
    tpu.vector_store %arg9[%c0_16, %c0_17], %14 {strides = array<i32>} : memref<16x64xf32, #tpu.memory_space<vmem>>, vector<16x64xf32>,
    %c0_18 = arith.constant 0 : index
    %c0_19 = arith.constant 0 : index
    %16 = vector.load %arg8[%c0_18, %c0_19] : memref<1x8xf32, #tpu.memory_space<vmem>>, vector<1x8xf32>
    %17 = vector.broadcast %16 : vector<1x8xf32> to vector<16x8xf32>
    %18 = arith.addf %11, %17 : vector<16x8xf32>
    %c0_20 = arith.constant 0 : index
    %c0_21 = arith.constant 0 : index
    %19 = vector.load %arg10[%c0_20, %c0_21] : memref<16x8xf32, #tpu.memory_space<vmem>>, vector<16x8xf32>
    tpu.vector_store %arg10[%c0_20, %c0_21], %18 {strides = array<i32>} : memref<16x8xf32, #tpu.memory_space<vmem>>, vector<16x8xf32>,
    return
  }
  func.func @transform_0(%arg0: i32) -> (i32, i32) {
    %c0_i32 = arith.constant 0 : i32
    %c0_i32_0 = arith.constant 0 : i32
    return %arg0, %c0_i32 : i32, i32
  }
  func.func @transform_1(%arg0: i32) -> (i32, i32) {
    %c0_i32 = arith.constant 0 : i32
    %c0_i32_0 = arith.constant 0 : i32
    return %arg0, %c0_i32 : i32, i32
  }
  func.func @transform_2(%arg0: i32) -> (i32, i32) {
    %c0_i32 = arith.constant 0 : i32
    %c0_i32_0 = arith.constant 0 : i32
    %c0_i32_1 = arith.constant 0 : i32
    return %c0_i32, %c0_i32_0 : i32, i32
  }
  func.func @transform_3(%arg0: i32) -> (i32, i32) {
    %c0_i32 = arith.constant 0 : i32
    %c0_i32_0 = arith.constant 0 : i32
    %c0_i32_1 = arith.constant 0 : i32
    return %c0_i32, %c0_i32_0 : i32, i32
  }
  func.func @transform_4(%arg0: i32) -> (i32, i32) {
    %c0_i32 = arith.constant 0 : i32
    %c0_i32_0 = arith.constant 0 : i32
    %c0_i32_1 = arith.constant 0 : i32
    return %c0_i32, %c0_i32_0 : i32, i32
  }
  func.func @transform_5(%arg0: i32) -> (i32, i32) {
    %c0_i32 = arith.constant 0 : i32
    %c0_i32_0 = arith.constant 0 : i32
    %c0_i32_1 = arith.constant 0 : i32
    return %c0_i32, %c0_i32_0 : i32, i32
  }
  func.func @transform_6(%arg0: i32) -> (i32, i32) {
    %c0_i32 = arith.constant 0 : i32
    %c0_i32_0 = arith.constant 0 : i32
    %c0_i32_1 = arith.constant 0 : i32
    return %c0_i32, %c0_i32_0 : i32, i32
  }
  func.func @transform_7(%arg0: i32) -> (i32, i32) {
    %c0_i32 = arith.constant 0 : i32
    %c0_i32_0 = arith.constant 0 : i32
    %c0_i32_1 = arith.constant 0 : i32
    return %c0_i32, %c0_i32_0 : i32, i32
  }
  func.func @transform_8(%arg0: i32) -> (i32, i32) {
    %c0_i32 = arith.constant 0 : i32
    %c0_i32_0 = arith.constant 0 : i32
    return %arg0, %c0_i32 : i32, i32
  }
  func.func @transform_9(%arg0: i32) -> (i32, i32) {
    %c0_i32 = arith.constant 0 : i32
    %c0_i32_0 = arith.constant 0 : i32
    return %arg0, %c0_i32 : i32, i32
  }
}

</mosaic_0001>

<bundles_post_ra>
// kernel: tpu_custom_call.1
= control target key start
LH: loop header
LB: loop body
LE: loop exit
PB: predicated region body
PF: predicated region fallthrough
CT: control target
= control target key end

     0   :  { %vm45_vm0 = vcmask 64512   ;;  %vm127_vm1 = vcmask 523264   ;;  %s712_s0 = inlined_call_operand.vmem [shape: f32[16,64], index: 0, kind: input, shape index: {}]   ;;  %s713_s1 = inlined_call_operand.vmem [shape: f32[16,8], index: 1, kind: input, shape index: {}]   ;;  %s714_s2 = inlined_call_operand.vmem [shape: f32[64,64], index: 2, kind: input, shape index: {}]   ;;  %s715_s3 = inlined_call_operand.vmem [shape: f32[8,64], index: 3, kind: input, shape index: {}]   ;;  %s716_s4 = inlined_call_operand.vmem [shape: f32[64,8], index: 4, kind: input, shape index: {}]   ;;  %s717_s5 = inlined_call_operand.vmem [shape: f32[8,8], index: 5, kind: input, shape index: {}]   ;;  %s718_s6 = inlined_call_operand.vmem [shape: f32[1,64], index: 6, kind: input, shape index: {}]   ;;  %s719_s7 = inlined_call_operand.vmem [shape: f32[1,8], index: 7, kind: input, shape index: {}]   ;;  %s720_s8 = inlined_call_operand.hbm [shape: f32[16,64], index: 8, kind: output, shape index: {0}]   ;;  %s721_s9 = inlined_call_operand.vmem [shape: f32[16,8], index: 9, kind: output, shape index: {1}]  }
   0x1   :  { %v44_v0 = vld [vmem:[%s715_s3] sm:$0xff]  ;;  %v37_v4 = vld [vmem:[%s714_s2 + $0x8] sm:$0xff]  ;;  %v38_v9 = vld [vmem:[%s714_s2 + $0x10] sm:$0xff] }
   0x2   :  { %v217_v1 = vld [vmem:[%s717_s5] sm:$0xff]  ;;  %446 = vmatprep.subr.mxu0 %v44_v0  ;;  %v210_v7 = vld [vmem:[%s716_s4 + $0x8] sm:$0xff]  ;;  %v39_v11 = vld [vmem:[%s714_s2 + $0x18] sm:$0xff] }
   0x3   :  { %v34_v2 = vld [vmem:[%s713_s1] sm:$0xff]  ;;  %470 = vmatprep.subr.mxu1 %v217_v1  ;;  %447 = vmatpush3.msra.mxu0 %v44_v0  ;;  %v35_v8 = vld [vmem:[%s713_s1 + $0x8] sm:$0xff]  ;;  %v211_v12 = vld [vmem:[%s716_s4 + $0x10] sm:$0xff]  ;;  %v498_v14 = vpack.c.bf16 %v39_v11, %v38_v9 }
   0x4   :  { %v36_v3 = vld [vmem:[%s714_s2] sm:$0xff]  ;;  %471 = vmatpush3.msra.mxu1 %v217_v1  ;;  %448 = vmatprep.mubr.msk.f32.mxu0 %vm45_vm0, %v34_v2  ;;  %v212_v13 = vld [vmem:[%s716_s4 + $0x18] sm:$0xff]  ;;  %v41_v17 = vld [vmem:[%s714_s2 + $0x28] sm:$0xff] }
   0x5   :  { %v209_v5 = vld [vmem:[%s716_s4] sm:$0xff]  ;;  %v494_v6 = vpack.c.bf16 %v37_v4, %v36_v3  ;;  %472 = vmatprep.mubr.msk.f32.mxu1 %vm45_vm0, %v34_v2  ;;  %449 = vmatmul.mubr.msk.f32.vlgmr.msra.gmra.mrb[0].mxu0 %vm45_vm0, %v35_v8  ;;  %v514_v15 = vpack.c.bf16 %v212_v13, %v211_v12  ;;  %v214_v19 = vld [vmem:[%s716_s4 + $0x28] sm:$0xff]  ;;  %v42_v22 = vld [vmem:[%s714_s2 + $0x30] sm:$0xff] }
   0x6   :  { %v510_v10 = vpack.c.bf16 %v210_v7, %v209_v5  ;;  %v40_v16 = vld [vmem:[%s714_s2 + $0x20] sm:$0xff]  ;;  %473 = vmatmul.mubr.msk.f32.vlgmr.msra.gmra.mrb[0].mxu1 %vm45_vm0, %v35_v8  ;;  %v43_v23 = vld [vmem:[%s714_s2 + $0x38] sm:$0xff] }
   0x7   :  { %495 = vmatprep.subr.bf16.mxu0 %v494_v6  ;;  %v213_v18 = vld [vmem:[%s716_s4 + $0x20] sm:$0xff]  ;;  %v502_v20 = vpack.c.bf16 %v41_v17, %v40_v16 }
   0x8   :  { %511 = vmatprep.subr.bf16.mxu1 %v510_v10  ;;  %497 = vmatpush3.bf16.msra.mxu0 %v494_v6  ;;  %v32_v21 = vld [vmem:[%s712_s0] sm:$0xff] }
   0x9   :  { %499 = vmatprep.subr.bf16.mxu0 %v498_v14  ;;  %513 = vmatpush3.bf16.msra.mxu1 %v510_v10 }
   0xa   :  { %467 = vmatprep.mubr.msk.f32.mxu0 %vm127_vm1, %v32_v21 }
   0xb   :  { %15 = vsyncpa [#allocation3], 0  ;;  %515 = vmatprep.subr.bf16.mxu1 %v514_v15  ;;  %v518_v24 = vpack.c.bf16 %v214_v19, %v213_v18  ;;  %491 = vmatprep.mubr.msk.f32.mxu1 %vm127_vm1, %v32_v21  ;;  %v215_v25 = vld [vmem:[%s716_s4 + $0x30] sm:$0xff]  ;;  %v216_v26 = vld [vmem:[%s716_s4 + $0x38] sm:$0xff]  ;;  %v506_v27 = vpack.c.bf16 %v43_v23, %v42_v22  ;;  %s557_s27 = smov [#allocation2]  }
   0xc   :  { %501 = vmatpush3.bf16.msra.mxu0 %v498_v14  ;;  %v522_v28 = vpack.c.bf16 %v216_v26, %v215_v25  ;;  %v33_v29 = vld [vmem:[%s712_s0 + $0x8] sm:$0xff]  ;;  %v418_v30 = vld [vmem:[%s718_s6] ss:$0 sm:$0xff]  ;;  %s395_s28 = sshll.u32 %s557_s27, 4  ;;  %s396_s28 = int_to_ptr.vmem [resolvable:$true] %s395_s28 }
   0xd   :  { %503 = vmatprep.subr.bf16.mxu0 %v502_v20  ;;  %517 = vmatpush3.bf16.msra.mxu1 %v514_v15  ;;  %v419_v32 = vld [vmem:[%s719_s7] ss:$0 sm:$0xff]  ;;  %s533_s1 = scalar_lea.vmem %s396_s28, 256  ;;  %p538_p1 = scmp.lt.s32.totalorder %s396_s28, %s396_s28 }
   0xe   :  { %519 = vmatprep.subr.bf16.mxu1 %v518_v24  ;;  %p534_p0 = scmp.ne.s32.totalorder %s396_s28, %s533_s1  ;;  %p539_p2 = scmp.lt.s32.totalorder %s533_s1, %s533_s1 }
  0x10   :  { %505 = vmatpush3.bf16.msra.mxu0 %v502_v20  ;;  %p540_p3 = por %p539_p2, %p538_p1 }
  0x11   :  { %507 = vmatprep.subr.bf16.mxu0 %v506_v27  ;;  %521 = vmatpush3.bf16.msra.mxu1 %v518_v24 }
  0x12   :  { %523 = vmatprep.subr.bf16.mxu1 %v522_v28  ;;  %p541_p4 = pnand %p540_p3, %p534_p0 }
  0x14   :  { %509 = vmatpush3.bf16.msra.mxu0 %v506_v27 }
  0x15   :  { %525 = vmatpush3.bf16.msra.mxu1 %v522_v28 }
  0x17   :  { %468 = vmatmul.mubr.msk.f32.vlgmr.msra.gmra.mrb[0].mxu0 %vm127_vm1, %v33_v29 }
  0x18   :  { %492 = vmatmul.mubr.msk.f32.vlgmr.msra.gmra.mrb[0].mxu1 %vm127_vm1, %v33_v29 }
  0xea   :  { %v469_v31 = vpop.f32.mrb[0].mxu0 }
  0xeb   :  { %v376_v33 = vadd.f32 %v469_v31, %v418_v30  ;;  %v200_v34 = vpop.f32.mrb[1].mxu0  ;;  %v493_v35 = vpop.f32.mrb[0].mxu1 }
  0xec   :  { %v375_v36 = vadd.f32 %v418_v30, %v200_v34  ;;  %v387_v37 = vadd.f32 %v493_v35, %v419_v32  ;;  %v359_v38 = vpop.f32.mrb[1].mxu1 }
  0xed   :  { %378 = vst.msk [vmem:[#allocation2 + $0x8] sm:$0xff] %vm127_vm1, %v376_v33  ;;  %v386_v39 = vadd.f32 %v419_v32, %v359_v38 }
  0xee   :  { %377 = vst.msk [vmem:[#allocation2] sm:$0xff] %vm127_vm1, %v375_v36 }
  0xef   :  { %389 = vst.msk [vmem:[%s721_s9 + $0x8] sm:$0xff] %vm45_vm0, %v387_v37 }
  0xf0   :  { %544 = shalt.err (!%p541_p4)
}
  0xf1   :  { %s545_s11 = scalar_lea.hbm %s720_s8, 256 }
  0xf2   :  { %p546_p5 = scmp.ne.s32.totalorder %s720_s8, %s545_s11  ;;  %p549_p6 = scmp.lt.u32.totalorder %s545_s11, %s720_s8 }
  0xf4   :  { %p551_p7 = pnand %p549_p6, %p546_p5 }
  0xf6   :  { %554 = shalt.err (!%p551_p7)
}
  0xf7   :  { %s558_s16 = smov 128   ;;  %s559_s17 = smov 8   ;;  %388 = vst.msk [vmem:[%s721_s9] sm:$0xff] %vm45_vm0, %v386_v39 }
  0xf8   :  { %401 = dma.vmem_to_hbm [thread:$0]  %s396_s28, 256, %s720_s8, [#allocation3], %s558_s16, %s558_s16, %s559_s17  }
  0xf9   :  { %555 = dma.done.wait [#allocation3], 256  }
  0xfa   :  { %556 = vsyncadd [#allocation3], 4294967040 }
  0xfb   :  { %409 = vsyncpa [#allocation3], 1 }

</bundles_post_ra>
